<compile_context>
chip_gen: v7x
topology: tpu7x:2x2x1
jax: 0.10.0
libtpu: 0.0.40
codegen_flags: <defaults>
</compile_context>

<pallas_src>
import jax
import jax.numpy as jnp
from jax.experimental import pallas as pl
from jax.experimental.pallas import tpu as pltpu

LN_EPS = 1e-5  # PyTorch nn.LayerNorm default


def _critic_sf_kernel(
    obs_ref, act_ref, task_ref,
    two_ref, twa_ref, tb_ref, g_ref, be_ref,
    w1_ref, b1_ref, w2_ref, b2_ref,
    out_ref,
):
    # ---- trunk: Linear(concat([obs, action])) as two bf16 matmuls ----------
    obs = obs_ref[...].astype(jnp.bfloat16)
    act = act_ref[...].astype(jnp.bfloat16)
    h = (jnp.dot(obs, two_ref[...], preferred_element_type=jnp.float32)
         + jnp.dot(act, twa_ref[...], preferred_element_type=jnp.float32)
         + tb_ref[...])                                   # (bb, H) f32

    # ---- LayerNorm (one-pass stats, clamped variance) + Tanh ----------------
    mu = jnp.mean(h, axis=-1, keepdims=True)
    msq = jnp.mean(h * h, axis=-1, keepdims=True)
    var = jnp.maximum(msq - mu * mu, 0.0)                 # guard cancellation
    h = (h - mu) * jax.lax.rsqrt(var + LN_EPS)
    h = jnp.tanh(h * g_ref[...] + be_ref[...])            # (bb, H)

    # ---- fused twin Q heads: Linear -> ReLU -> Linear (block-diag) ----------
    z = jnp.dot(h.astype(jnp.bfloat16), w1_ref[...],
                preferred_element_type=jnp.float32) + b1_ref[...]   # (bb, 2H)
    z = jnp.maximum(z, 0.0)
    q = jnp.dot(z.astype(jnp.bfloat16), w2_ref[...],
                preferred_element_type=jnp.float32) + b2_ref[...]   # (bb, 2*sf)

    # ---- einsum('bi,bi->b', task, q_k), lane-dense (2, bb) output -----------
    task = task_ref[...]                                  # (bb, sf) f32
    sf = task.shape[-1]
    q1 = jnp.sum(task * q[:, :sf], axis=-1, keepdims=True)    # (bb, 1)
    q2 = jnp.sum(task * q[:, sf:], axis=-1, keepdims=True)    # (bb, 1)
    out_ref[0:1, :] = q1.T                                # (1, bb) full-lane row
    out_ref[1:2, :] = q2.T


def init_params(key, obs_dim, action_dim, hidden_dim, sf_dim):
    """Deterministic synthetic parameters (shapes match the PyTorch module)."""
    in_dim = obs_dim + action_dim
    ks = jax.random.split(key, 8)

    def lin(k, din, dout):
        scale = 1.0 / jnp.sqrt(jnp.float32(din))
        w = jax.random.uniform(k, (din, dout), jnp.float32, -scale, scale)
        b = jnp.zeros((1, dout), jnp.float32)
        return w, b

    tw, tb = lin(ks[0], in_dim, hidden_dim)               # trunk Linear
    gamma = jnp.ones((1, hidden_dim), jnp.float32)        # LayerNorm weight
    beta = jnp.zeros((1, hidden_dim), jnp.float32)        # LayerNorm bias
    q1w1, q1b1 = lin(ks[1], hidden_dim, hidden_dim)
    q1w2, q1b2 = lin(ks[2], hidden_dim, sf_dim)
    q2w1, q2b1 = lin(ks[3], hidden_dim, hidden_dim)
    q2w2, q2b2 = lin(ks[4], hidden_dim, sf_dim)
    return dict(tw=tw, tb=tb, gamma=gamma, beta=beta,
                q1w1=q1w1, q1b1=q1b1, q1w2=q1w2, q1b2=q1b2,
                q2w1=q2w1, q2b1=q2b1, q2w2=q2w2, q2b2=q2b2)


def prepare_params(params, obs_dim):
    """One-time preprocessing: split trunk weight (fuses the input concat),
    fuse the twin Q heads, cast matmul weights to bf16 (f32 accumulation)."""
    tw = params["tw"]
    w1 = jnp.concatenate([params["q1w1"], params["q2w1"]], axis=1)   # (H, 2H)
    b1 = jnp.concatenate([params["q1b1"], params["q2b1"]], axis=1)   # (1, 2H)
    hdim, sdim = params["q1w2"].shape
    zero = jnp.zeros((hdim, sdim), jnp.float32)
    w2 = jnp.concatenate(                                            # (2H, 2*sf) block-diag
        [jnp.concatenate([params["q1w2"], zero], axis=1),
         jnp.concatenate([zero, params["q2w2"]], axis=1)], axis=0)
    b2 = jnp.concatenate([params["q1b2"], params["q2b2"]], axis=1)   # (1, 2*sf)

    bf16 = lambda a: a.astype(jnp.bfloat16)
    return dict(
        tw_obs=bf16(tw[:obs_dim]), tw_act=bf16(tw[obs_dim:]), tb=params["tb"],
        gamma=params["gamma"], beta=params["beta"],
        w1=bf16(w1), b1=b1, w2=bf16(w2), b2=b2,
    )


def _round_up(x, m):
    return ((x + m - 1) // m) * m


def _pick_batch_block(B, block_b):
    """Choose (bb, nb, Bp).

    Small batches run in a single grid step (block == full array, so no
    (8,128) divisibility constraints and no padding).  Otherwise bb is a
    multiple of 128 (lane-dense (2, bb) output tile + sublane alignment) and
    the grid has >= 2 steps so both v7x TensorCores get work under
    dimension_semantics=("parallel",).
    """
    LANE = 128
    if B < 2 * LANE:
        return B, 1, B
    bb = min(max(block_b, LANE), _round_up(pl.cdiv(B, 2), LANE))
    bb = _round_up(bb, LANE)
    nb = pl.cdiv(B, bb)
    return bb, nb, nb * bb


def critic_sf_forward(prep, obs, action, task, *, block_b=512):
    obs = obs.astype(jnp.float32)
    action = action.astype(jnp.float32)
    task = task.astype(jnp.float32)

    B = obs.shape[0]
    bb, nb, Bp = _pick_batch_block(B, block_b)
    if Bp != B:
        pad = ((0, Bp - B), (0, 0))
        obs = jnp.pad(obs, pad)
        action = jnp.pad(action, pad)
        task = jnp.pad(task, pad)

    obs_dim = obs.shape[1]
    act_dim = action.shape[1]
    sf_dim = task.shape[1]
    H = prep["w1"].shape[0]

    # ---- VMEM budget (per generation: cap at 64 MiB, valid on v5e/v6e/v7x) --
    weight_names = ("tw_obs", "tw_act", "tb", "gamma", "beta",
                    "w1", "b1", "w2", "b2")
    weight_bytes = sum(int(prep[k].size) * prep[k].dtype.itemsize
                       for k in weight_names)
    act_io_bytes = 2 * bb * (obs_dim + act_dim + sf_dim + 2) * 4   # dbl-buffered tiles
    inter_bytes = bb * (H * 6 + 2 * H * 6 + 2 * sf_dim * 4 + 32)   # f32+bf16 intermediates
    vmem_limit = int(min(64 << 20,
                         max(32 << 20,
                             2 * weight_bytes + act_io_bytes
                             + 2 * inter_bytes + (2 << 20))))

    # ---- cost estimate so XLA schedules surrounding ops sensibly ------------
    flops = 2 * Bp * ((obs_dim + act_dim) * H + H * 2 * H
                      + 2 * H * 2 * sf_dim + 2 * sf_dim)
    bytes_accessed = weight_bytes + Bp * (obs_dim + act_dim + sf_dim + 2) * 4
    cost = pl.CostEstimate(flops=int(flops), transcendentals=int(Bp * H),
                           bytes_accessed=int(bytes_accessed))

    row = lambda d: pl.BlockSpec((bb, d), lambda i: (i, 0))       # batch-tiled
    full = lambda a: pl.BlockSpec(a.shape, lambda i: (0, 0))      # VMEM-resident

    out = pl.pallas_call(
        _critic_sf_kernel,
        out_shape=jax.ShapeDtypeStruct((2, Bp), jnp.float32),     # lane-dense
        grid=(nb,),
        in_specs=[
            row(obs_dim), row(act_dim), row(sf_dim),
            full(prep["tw_obs"]), full(prep["tw_act"]), full(prep["tb"]),
            full(prep["gamma"]), full(prep["beta"]),
            full(prep["w1"]), full(prep["b1"]),
            full(prep["w2"]), full(prep["b2"]),
        ],
        out_specs=pl.BlockSpec((2, bb), lambda i: (0, i)),
        compiler_params=pltpu.CompilerParams(
            dimension_semantics=("parallel",),
            vmem_limit_bytes=vmem_limit),
        cost_estimate=cost,
    )(obs, action, task,
      prep["tw_obs"], prep["tw_act"], prep["tb"], prep["gamma"], prep["beta"],
      prep["w1"], prep["b1"], prep["w2"], prep["b2"])

    q1 = out[0, :B].reshape(-1, 1)
    q2 = out[1, :B].reshape(-1, 1)
    return q1, q2


def _reference_forward(params, obs, action, task, matmul_dtype=jnp.float32):
    """Module semantics in plain JAX. matmul_dtype=bf16 mirrors the kernel's
    MXU operand quantization (f32 accumulation) for a tight numerical check."""
    c = lambda a: a.astype(matmul_dtype)
    x = jnp.concatenate([obs, action], axis=-1).astype(jnp.float32)
    h = jnp.dot(c(x), c(params["tw"]), preferred_element_type=jnp.float32) + params["tb"]
    mu = jnp.mean(h, -1, keepdims=True)
    var = jnp.mean((h - mu) ** 2, -1, keepdims=True)
    h = (h - mu) * jax.lax.rsqrt(var + LN_EPS) * params["gamma"] + params["beta"]
    h = jnp.tanh(h)

    def q_head(w1, b1, w2, b2):
        z = jnp.maximum(
            jnp.dot(c(h), c(w1), preferred_element_type=jnp.float32) + b1, 0.0)
        return jnp.dot(c(z), c(w2), preferred_element_type=jnp.float32) + b2

    q1 = q_head(params["q1w1"], params["q1b1"], params["q1w2"], params["q1b2"])
    q2 = q_head(params["q2w1"], params["q2b1"], params["q2w2"], params["q2b2"])
    q1 = jnp.einsum("bi,bi->b", task, q1).reshape(-1, 1)
    q2 = jnp.einsum("bi,bi->b", task, q2).reshape(-1, 1)
    return q1, q2


if __name__ == "__main__":
    key = jax.random.PRNGKey(0)

    def run_case(B, obs_dim, act_dim, hidden_dim, sf_dim, block_b):
        k = jax.random.fold_in(key, B)
        k_obs, k_act, k_task, k_par = jax.random.split(k, 4)
        obs = jax.random.normal(k_obs, (B, obs_dim), jnp.float32)
        action = jax.random.normal(k_act, (B, act_dim), jnp.float32)
        task = jax.random.normal(k_task, (B, sf_dim), jnp.float32)

        params = init_params(k_par, obs_dim, act_dim, hidden_dim, sf_dim)
        prep = prepare_params(params, obs_dim)

        q1, q2 = critic_sf_forward(prep, obs, action, task, block_b=block_b)
        jax.block_until_ready((q1, q2))
        assert q1.shape == (B, 1) and q2.shape == (B, 1)

        # Tight check vs a reference using the same bf16-operand / f32-accum
        # matmul numerics as the kernel.
        r1b, r2b = _reference_forward(params, obs, action, task, jnp.bfloat16)
        assert jnp.allclose(q1, r1b, atol=5e-3, rtol=5e-3)
        assert jnp.allclose(q2, r2b, atol=5e-3, rtol=5e-3)

        # Loose check vs pure-f32 module semantics (bf16 MXU operands add
        # ~1e-2 absolute error at these magnitudes).
        r1, r2 = _reference_forward(params, obs, action, task, jnp.float32)
        assert jnp.allclose(q1, r1, atol=1e-1, rtol=1e-1)
        assert jnp.allclose(q2, r2, atol=1e-1, rtol=1e-1)

    # Small single-grid-step case (block == full arrays).
    run_case(B=8, obs_dim=24, act_dim=8, hidden_dim=32, sf_dim=16, block_b=512)
    # Multi-step grid + batch padding path (3 steps of bb=128, Bp=384).
    run_case(B=300, obs_dim=24, act_dim=8, hidden_dim=64, sf_dim=10, block_b=128)

    # NOTE: tile sweeps / benchmarking should be done at production shapes
    # (H~1024, sf~10, B>=1024), where the kernel is MXU-bound, not here.
    print("KERNEL_OK")
</pallas_src>

<mosaic_0001>
module attributes {stable_mosaic.version = 11 : i64} {
  func.func @_critic_sf_kernel(%arg0: i32, %arg1: memref<8x24xf32, #tpu.memory_space<vmem>>, %arg2: memref<8x8xf32, #tpu.memory_space<vmem>>, %arg3: memref<8x16xf32, #tpu.memory_space<vmem>>, %arg4: memref<24x32xbf16, #tpu.memory_space<vmem>>, %arg5: memref<8x32xbf16, #tpu.memory_space<vmem>>, %arg6: memref<1x32xf32, #tpu.memory_space<vmem>>, %arg7: memref<1x32xf32, #tpu.memory_space<vmem>>, %arg8: memref<1x32xf32, #tpu.memory_space<vmem>>, %arg9: memref<32x64xbf16, #tpu.memory_space<vmem>>, %arg10: memref<1x64xf32, #tpu.memory_space<vmem>>, %arg11: memref<64x32xbf16, #tpu.memory_space<vmem>>, %arg12: memref<1x32xf32, #tpu.memory_space<vmem>>, %arg13: memref<2x8xf32, #tpu.memory_space<vmem>>) attributes {dimension_semantics = [#tpu.dimension_semantics<parallel>], iteration_bounds = array<i64: 1>, scalar_prefetch = 0 : i64, scratch_operands = 0 : i64, tpu.core_type = #tpu.core_type<tc>, window_params = [{transform_indices = @transform_0, window_bounds = array<i64: 8, 24>}, {transform_indices = @transform_1, window_bounds = array<i64: 8, 8>}, {transform_indices = @transform_2, window_bounds = array<i64: 8, 16>}, {pipeline_mode = #tpu.pipeline_mode<synchronous>, transform_indices = @transform_3, window_bounds = array<i64: 24, 32>}, {pipeline_mode = #tpu.pipeline_mode<synchronous>, transform_indices = @transform_4, window_bounds = array<i64: 8, 32>}, {pipeline_mode = #tpu.pipeline_mode<synchronous>, transform_indices = @transform_5, window_bounds = array<i64: 1, 32>}, {pipeline_mode = #tpu.pipeline_mode<synchronous>, transform_indices = @transform_6, window_bounds = array<i64: 1, 32>}, {pipeline_mode = #tpu.pipeline_mode<synchronous>, transform_indices = @transform_7, window_bounds = array<i64: 1, 32>}, {pipeline_mode = #tpu.pipeline_mode<synchronous>, transform_indices = @transform_8, window_bounds = array<i64: 32, 64>}, {pipeline_mode = #tpu.pipeline_mode<synchronous>, transform_indices = @transform_9, window_bounds = array<i64: 1, 64>}, {pipeline_mode = #tpu.pipeline_mode<synchronous>, transform_indices = @transform_10, window_bounds = array<i64: 64, 32>}, {pipeline_mode = #tpu.pipeline_mode<synchronous>, transform_indices = @transform_11, window_bounds = array<i64: 1, 32>}, {transform_indices = @transform_12, window_bounds = array<i64: 2, 8>}]} {
    %c0 = arith.constant 0 : index
    %c0_0 = arith.constant 0 : index
    %0 = vector.load %arg1[%c0, %c0_0] : memref<8x24xf32, #tpu.memory_space<vmem>>, vector<8x24xf32>
    %1 = arith.truncf %0 : vector<8x24xf32> to vector<8x24xbf16>
    %c0_1 = arith.constant 0 : index
    %c0_2 = arith.constant 0 : index
    %2 = vector.load %arg2[%c0_1, %c0_2] : memref<8x8xf32, #tpu.memory_space<vmem>>, vector<8x8xf32>
    %3 = arith.truncf %2 : vector<8x8xf32> to vector<8x8xbf16>
    %c0_3 = arith.constant 0 : index
    %c0_4 = arith.constant 0 : index
    %4 = vector.load %arg4[%c0_3, %c0_4] : memref<24x32xbf16, #tpu.memory_space<vmem>>, vector<24x32xbf16>
    %cst = arith.constant dense<0.000000e+00> : vector<8x32xf32>
    %5 = tpu.matmul %1, %4, %cst {dimension_numbers = #tpu.dot_dimension_numbers<[1], [0], [0], [1], [0, 0, 1, 1], [], []>} : vector<8x24xbf16>, vector<24x32xbf16>, vector<8x32xf32> -> vector<8x32xf32>
    %c0_5 = arith.constant 0 : index
    %c0_6 = arith.constant 0 : index
    %6 = vector.load %arg5[%c0_5, %c0_6] : memref<8x32xbf16, #tpu.memory_space<vmem>>, vector<8x32xbf16>
    %cst_7 = arith.constant dense<0.000000e+00> : vector<8x32xf32>
    %7 = tpu.matmul %3, %6, %cst_7 {dimension_numbers = #tpu.dot_dimension_numbers<[1], [0], [0], [1], [0, 0, 1, 1], [], []>} : vector<8x8xbf16>, vector<8x32xbf16>, vector<8x32xf32> -> vector<8x32xf32>
    %8 = arith.addf %5, %7 : vector<8x32xf32>
    %c0_8 = arith.constant 0 : index
    %c0_9 = arith.constant 0 : index
    %9 = vector.load %arg6[%c0_8, %c0_9] : memref<1x32xf32, #tpu.memory_space<vmem>>, vector<1x32xf32>
    %10 = vector.broadcast %9 : vector<1x32xf32> to vector<8x32xf32>
    %11 = arith.addf %8, %10 : vector<8x32xf32>
    %cst_10 = arith.constant dense<0.000000e+00> : vector<8xf32>
    %12 = vector.multi_reduction <add>, %11, %cst_10 [1] : vector<8x32xf32> to vector<8xf32>
    %13 = vector.shape_cast %12 : vector<8xf32> to vector<8x1xf32>
    %cst_11 = arith.constant 3.200000e+01 : f32
    %14 = vector.broadcast %cst_11 : f32 to vector<8x1xf32>
    %15 = arith.divf %13, %14 : vector<8x1xf32>
    %16 = arith.mulf %11, %11 : vector<8x32xf32>
    %cst_12 = arith.constant dense<0.000000e+00> : vector<8xf32>
    %17 = vector.multi_reduction <add>, %16, %cst_12 [1] : vector<8x32xf32> to vector<8xf32>
    %18 = vector.shape_cast %17 : vector<8xf32> to vector<8x1xf32>
    %cst_13 = arith.constant 3.200000e+01 : f32
    %19 = vector.broadcast %cst_13 : f32 to vector<8x1xf32>
    %20 = arith.divf %18, %19 : vector<8x1xf32>
    %21 = arith.mulf %15, %15 : vector<8x1xf32>
    %22 = arith.subf %20, %21 : vector<8x1xf32>
    %cst_14 = arith.constant 0.000000e+00 : f32
    %23 = vector.broadcast %cst_14 : f32 to vector<8x1xf32>
    %24 = arith.maximumf %22, %23 : vector<8x1xf32>
    %25 = vector.broadcast %15 : vector<8x1xf32> to vector<8x32xf32>
    %26 = arith.subf %11, %25 : vector<8x32xf32>
    %cst_15 = arith.constant 9.99999974E-6 : f32
    %27 = vector.broadcast %cst_15 : f32 to vector<8x1xf32>
    %28 = arith.addf %24, %27 : vector<8x1xf32>
    %29 = math.rsqrt %28 : vector<8x1xf32>
    %30 = vector.broadcast %29 : vector<8x1xf32> to vector<8x32xf32>
    %31 = arith.mulf %26, %30 : vector<8x32xf32>
    %c0_16 = arith.constant 0 : index
    %c0_17 = arith.constant 0 : index
    %32 = vector.load %arg7[%c0_16, %c0_17] : memref<1x32xf32, #tpu.memory_space<vmem>>, vector<1x32xf32>
    %33 = vector.broadcast %32 : vector<1x32xf32> to vector<8x32xf32>
    %34 = arith.mulf %31, %33 : vector<8x32xf32>
    %c0_18 = arith.constant 0 : index
    %c0_19 = arith.constant 0 : index
    %35 = vector.load %arg8[%c0_18, %c0_19] : memref<1x32xf32, #tpu.memory_space<vmem>>, vector<1x32xf32>
    %36 = vector.broadcast %35 : vector<1x32xf32> to vector<8x32xf32>
    %37 = arith.addf %34, %36 : vector<8x32xf32>
    %38 = math.tanh %37 : vector<8x32xf32>
    %39 = arith.truncf %38 : vector<8x32xf32> to vector<8x32xbf16>
    %c0_20 = arith.constant 0 : index
    %c0_21 = arith.constant 0 : index
    %40 = vector.load %arg9[%c0_20, %c0_21] : memref<32x64xbf16, #tpu.memory_space<vmem>>, vector<32x64xbf16>
    %cst_22 = arith.constant dense<0.000000e+00> : vector<8x64xf32>
    %41 = tpu.matmul %39, %40, %cst_22 {dimension_numbers = #tpu.dot_dimension_numbers<[1], [0], [0], [1], [0, 0, 1, 1], [], []>} : vector<8x32xbf16>, vector<32x64xbf16>, vector<8x64xf32> -> vector<8x64xf32>
    %c0_23 = arith.constant 0 : index
    %c0_24 = arith.constant 0 : index
    %42 = vector.load %arg10[%c0_23, %c0_24] : memref<1x64xf32, #tpu.memory_space<vmem>>, vector<1x64xf32>
    %43 = vector.broadcast %42 : vector<1x64xf32> to vector<8x64xf32>
    %44 = arith.addf %41, %43 : vector<8x64xf32>
    %cst_25 = arith.constant 0.000000e+00 : f32
    %45 = vector.broadcast %cst_25 : f32 to vector<8x64xf32>
    %46 = arith.maximumf %44, %45 : vector<8x64xf32>
    %47 = arith.truncf %46 : vector<8x64xf32> to vector<8x64xbf16>
    %c0_26 = arith.constant 0 : index
    %c0_27 = arith.constant 0 : index
    %48 = vector.load %arg11[%c0_26, %c0_27] : memref<64x32xbf16, #tpu.memory_space<vmem>>, vector<64x32xbf16>
    %cst_28 = arith.constant dense<0.000000e+00> : vector<8x32xf32>
    %49 = tpu.matmul %47, %48, %cst_28 {dimension_numbers = #tpu.dot_dimension_numbers<[1], [0], [0], [1], [0, 0, 1, 1], [], []>} : vector<8x64xbf16>, vector<64x32xbf16>, vector<8x32xf32> -> vector<8x32xf32>
    %c0_29 = arith.constant 0 : index
    %c0_30 = arith.constant 0 : index
    %50 = vector.load %arg12[%c0_29, %c0_30] : memref<1x32xf32, #tpu.memory_space<vmem>>, vector<1x32xf32>
    %51 = vector.broadcast %50 : vector<1x32xf32> to vector<8x32xf32>
    %52 = arith.addf %49, %51 : vector<8x32xf32>
    %c0_31 = arith.constant 0 : index
    %c0_32 = arith.constant 0 : index
    %53 = vector.load %arg3[%c0_31, %c0_32] : memref<8x16xf32, #tpu.memory_space<vmem>>, vector<8x16xf32>
    %54 = vector.extract_strided_slice %52 {offsets = [0, 0], sizes = [8, 16], strides = [1, 1]} : vector<8x32xf32> to vector<8x16xf32>
    %55 = arith.mulf %53, %54 : vector<8x16xf32>
    %cst_33 = arith.constant dense<0.000000e+00> : vector<8xf32>
    %56 = vector.multi_reduction <add>, %55, %cst_33 [1] : vector<8x16xf32> to vector<8xf32>
    %57 = vector.shape_cast %56 : vector<8xf32> to vector<8x1xf32>
    %58 = vector.extract_strided_slice %52 {offsets = [0, 16], sizes = [8, 16], strides = [1, 1]} : vector<8x32xf32> to vector<8x16xf32>
    %59 = arith.mulf %53, %58 : vector<8x16xf32>
    %cst_34 = arith.constant dense<0.000000e+00> : vector<8xf32>
    %60 = vector.multi_reduction <add>, %59, %cst_34 [1] : vector<8x16xf32> to vector<8xf32>
    %61 = vector.shape_cast %60 : vector<8xf32> to vector<8x1xf32>
    %62 = tpu.transpose %57, [1, 0] : vector<8x1xf32> -> vector<1x8xf32>
    %c0_35 = arith.constant 0 : index
    %c0_36 = arith.constant 0 : index
    %63 = vector.load %arg13[%c0_35, %c0_36] : memref<2x8xf32, #tpu.memory_space<vmem>>, vector<1x8xf32>
    tpu.vector_store %arg13[%c0_35, %c0_36], %62 {strides = array<i32>} : memref<2x8xf32, #tpu.memory_space<vmem>>, vector<1x8xf32>,
    %64 = tpu.transpose %61, [1, 0] : vector<8x1xf32> -> vector<1x8xf32>
    %c1 = arith.constant 1 : index
    %c0_37 = arith.constant 0 : index
    %65 = vector.load %arg13[%c1, %c0_37] : memref<2x8xf32, #tpu.memory_space<vmem>>, vector<1x8xf32>
    tpu.vector_store %arg13[%c1, %c0_37], %64 {strides = array<i32>} : memref<2x8xf32, #tpu.memory_space<vmem>>, vector<1x8xf32>,
    return
  }
  func.func @transform_0(%arg0: i32) -> (i32, i32) {
    %c0_i32 = arith.constant 0 : i32
    %c0_i32_0 = arith.constant 0 : i32
    return %arg0, %c0_i32 : i32, i32
  }
  func.func @transform_1(%arg0: i32) -> (i32, i32) {
    %c0_i32 = arith.constant 0 : i32
    %c0_i32_0 = arith.constant 0 : i32
    return %arg0, %c0_i32 : i32, i32
  }
  func.func @transform_2(%arg0: i32) -> (i32, i32) {
    %c0_i32 = arith.constant 0 : i32
    %c0_i32_0 = arith.constant 0 : i32
    return %arg0, %c0_i32 : i32, i32
  }
  func.func @transform_3(%arg0: i32) -> (i32, i32) {
    %c0_i32 = arith.constant 0 : i32
    %c0_i32_0 = arith.constant 0 : i32
    %c0_i32_1 = arith.constant 0 : i32
    return %c0_i32, %c0_i32_0 : i32, i32
  }
  func.func @transform_4(%arg0: i32) -> (i32, i32) {
    %c0_i32 = arith.constant 0 : i32
    %c0_i32_0 = arith.constant 0 : i32
    %c0_i32_1 = arith.constant 0 : i32
    return %c0_i32, %c0_i32_0 : i32, i32
  }
  func.func @transform_5(%arg0: i32) -> (i32, i32) {
    %c0_i32 = arith.constant 0 : i32
    %c0_i32_0 = arith.constant 0 : i32
    %c0_i32_1 = arith.constant 0 : i32
    return %c0_i32, %c0_i32_0 : i32, i32
  }
  func.func @transform_6(%arg0: i32) -> (i32, i32) {
    %c0_i32 = arith.constant 0 : i32
    %c0_i32_0 = arith.constant 0 : i32
    %c0_i32_1 = arith.constant 0 : i32
    return %c0_i32, %c0_i32_0 : i32, i32
  }
  func.func @transform_7(%arg0: i32) -> (i32, i32) {
    %c0_i32 = arith.constant 0 : i32
    %c0_i32_0 = arith.constant 0 : i32
    %c0_i32_1 = arith.constant 0 : i32
    return %c0_i32, %c0_i32_0 : i32, i32
  }
  func.func @transform_8(%arg0: i32) -> (i32, i32) {
    %c0_i32 = arith.constant 0 : i32
    %c0_i32_0 = arith.constant 0 : i32
    %c0_i32_1 = arith.constant 0 : i32
    return %c0_i32, %c0_i32_0 : i32, i32
  }
  func.func @transform_9(%arg0: i32) -> (i32, i32) {
    %c0_i32 = arith.constant 0 : i32
    %c0_i32_0 = arith.constant 0 : i32
    %c0_i32_1 = arith.constant 0 : i32
    return %c0_i32, %c0_i32_0 : i32, i32
  }
  func.func @transform_10(%arg0: i32) -> (i32, i32) {
    %c0_i32 = arith.constant 0 : i32
    %c0_i32_0 = arith.constant 0 : i32
    %c0_i32_1 = arith.constant 0 : i32
    return %c0_i32, %c0_i32_0 : i32, i32
  }
  func.func @transform_11(%arg0: i32) -> (i32, i32) {
    %c0_i32 = arith.constant 0 : i32
    %c0_i32_0 = arith.constant 0 : i32
    %c0_i32_1 = arith.constant 0 : i32
    return %c0_i32, %c0_i32_0 : i32, i32
  }
  func.func @transform_12(%arg0: i32) -> (i32, i32) {
    %c0_i32 = arith.constant 0 : i32
    %c0_i32_0 = arith.constant 0 : i32
    return %c0_i32, %arg0 : i32, i32
  }
}

</mosaic_0001>

<bundles_post_ra>
// kernel: tpu_custom_call.1
= control target key start
LH: loop header
LB: loop body
LE: loop exit
PB: predicated region body
PF: predicated region fallthrough
CT: control target
= control target key end

     0   :  { %vm55_vm0 = vcmask 1043456   ;;  %v549_v1 = vmov 0.0   ;;  %vm550_vm1 = vmmov 0   ;;  %vm51_vm2 = vcmask 64512   ;;  %s703_s0 = inlined_call_operand.vmem [shape: f32[8,24], index: 0, kind: input, shape index: {}]   ;;  %s704_s1 = inlined_call_operand.vmem [shape: f32[8,8], index: 1, kind: input, shape index: {}]   ;;  %s705_s2 = inlined_call_operand.vmem [shape: f32[8,16], index: 2, kind: input, shape index: {}]   ;;  %s706_s3 = inlined_call_operand.vmem [shape: bf16[24,32], index: 3, kind: input, shape index: {}]   ;;  %s707_s4 = inlined_call_operand.vmem [shape: bf16[8,32], index: 4, kind: input, shape index: {}]   ;;  %s708_s5 = inlined_call_operand.vmem [shape: f32[1,32], index: 5, kind: input, shape index: {}]   ;;  %s709_s6 = inlined_call_operand.vmem [shape: f32[1,32], index: 6, kind: input, shape index: {}]   ;;  %s710_s7 = inlined_call_operand.vmem [shape: f32[1,32], index: 7, kind: input, shape index: {}]   ;;  %s711_s8 = inlined_call_operand.vmem [shape: bf16[32,64], index: 8, kind: input, shape index: {}]   ;;  %s712_s9 = inlined_call_operand.vmem [shape: f32[1,64], index: 9, kind: input, shape index: {}]   ;;  %s713_s10 = inlined_call_operand.vmem [shape: bf16[64,32], index: 10, kind: input, shape index: {}]   ;;  %s714_s11 = inlined_call_operand.vmem [shape: f32[1,32], index: 11, kind: input, shape index: {}]   ;;  %s715_s12 = inlined_call_operand.hbm [shape: f32[2,8], index: 12, kind: output, shape index: {}]  }
   0x1   :  { %v50_v0 = vld [vmem:[%s707_s4] sm:$0xf]  ;;  %475 = vmatprep.subr.bf16.mxu0 %v549_v1  ;;  %497 = vmatprep.subr.bf16.mxu1 %v549_v1  ;;  %v513_v6 = vld [vmem:[%s706_s3 + $0x8] ss:$0 sps:$4 sm:$0xff]  }
   0x2   :  { %v57_v2 = vsel %vm55_vm0, %v50_v0, 0  ;;  %v45_v3 = vld [vmem:[%s704_s1] sm:$0xff]  ;;  %477 = vmatprep.mubr.msk.bf16.mxu0 %vm550_vm1, %v549_v1  ;;  %505 = vmatprep.mubr.msk.bf16.mxu1 %vm550_vm1, %v549_v1  ;;  %v113_v8 = vsel %vm55_vm0, %v513_v6, 0 }
   0x3   :  { %476 = vmatpush3.bf16.msra.mxu0 %v57_v2  ;;  %v46_v4 = vpack.c.bf16 %v45_v3, %v45_v3  ;;  %v514_v5 = vld [vmem:[%s706_s3] sm:$0xff]  }
   0x4   :  { %481 = vmatprep.subr.bf16.mxu0 %v549_v1  ;;  %v43_v7 = vld [vmem:[%s703_s0] sm:$0xff] }
   0x6   :  { %478 = vmatmul.mubr.msk.bf16.vlgmr.msra.gmra.mrb[0].mxu0 %vm51_vm2, %v46_v4 }
   0x7   :  { %482 = vmatpush3.bf16.msra.mxu0 %v514_v5  ;;  %485 = vmatprep.mubr.msk.bf16.mxu0 %vm550_vm1, %v549_v1 }
   0x8   :  { %483 = vmatprep.subr.bf16.mxu0 %v549_v1 }
   0x9   :  { %17 = vsyncpa [#allocation3], 0  ;;  %v44_v9 = vpack.c.bf16 %v43_v7, %v43_v7  ;;  %vm108_vm3 = vcmask 195584   ;;  %v449_v15 = vld [vmem:[%s708_s5] ss:$0 sm:$0xff]  ;;  %vm163_vm4 = vcmask 261120  }
   0xa   :  { %v515_v24 = vld [vmem:[%s711_s8] sm:$0xff]   ;;  %v516_v25 = vld [vmem:[%s711_s8 + $0x8] sm:$0xff]   ;;  %v519_v45 = vld [vmem:[%s713_s10 + $0x10] sm:$0xff]   ;;  %vm306_vm5 = vcmask 523264   ;;  %vm352_vm6 = vcmask 130048   ;;  %vm396_vm7 = vcmask 57344  }
   0xb   :  { %484 = vmatpush3.bf16.msra.mxu0 %v113_v8  ;;  %v517_v26 = vld [vmem:[%s713_s10] sm:$0xff]   ;;  %v518_v27 = vld [vmem:[%s713_s10 + $0x8] sm:$0xff]   ;;  %v520_v46 = vld [vmem:[%s713_s10 + $0x18] sm:$0xff]   ;;  %s551_s10 = smov 112  }
   0xc   :  { %489 = vmatprep.subr.bf16.mxu0 %v549_v1  ;;  %498 = vmatpush3.bf16.msra.mxu1 %v517_v26  ;;  %v450_v38 = vld [vmem:[%s709_s6] ss:$0 sm:$0xff] }
   0xd   :  { %499 = vmatprep.subr.bf16.mxu1 %v549_v1  ;;  %v451_v40 = vld [vmem:[%s710_s7] ss:$0 sm:$0xff] }
   0xe   :  { %486 = vmatmul.mubr.msk.bf16.vlgmr.msra.gmra.mrb[4].mxu0 %vm108_vm3, %v44_v9  ;;  %v452_v47 = vld [vmem:[%s712_s9] ss:$0 sm:$0xff] }
   0xf   :  { %493 = vmatprep.mubr.msk.bf16.mxu0 %vm550_vm1, %v549_v1  ;;  %490 = vmatpush3.bf16.msra.mxu0 %v515_v24  ;;  %v456_v55 = vld [vmem:[%s714_s11] ss:$0 sm:$0xff]  ;;  %s552_s11 = smov [#allocation2]  }
  0x10   :  { %491 = vmatprep.subr.bf16.mxu0 %v549_v1  ;;  %500 = vmatpush3.bf16.msra.mxu1 %v518_v27  ;;  %v350_v61 = vld [vmem:[%s705_s2] sm:$0xff]  ;;  %s437_s27 = sshll.u32 %s552_s11, 4  ;;  %s438_s27 = int_to_ptr.vmem [resolvable:$true] %s437_s27 }
  0x11   :  { %501 = vmatprep.subr.bf16.mxu1 %v549_v1  ;;  %s525_s2 = scalar_lea.vmem %s438_s27, 32  ;;  %p530_p1 = scmp.lt.s32.totalorder %s438_s27, %s438_s27 }
  0x12   :  { %p526_p0 = scmp.ne.s32.totalorder %s438_s27, %s525_s2  ;;  %p531_p2 = scmp.lt.s32.totalorder %s525_s2, %s525_s2 }
  0x13   :  { %492 = vmatpush3.bf16.msra.mxu0 %v516_v25 }
  0x14   :  { %502 = vmatpush3.bf16.msra.mxu1 %v519_v45  ;;  %p532_p3 = por %p531_p2, %p530_p1 }
  0x15   :  { %503 = vmatprep.subr.bf16.mxu1 %v549_v1 }
  0x16   :  { %p533_p4 = pnand %p532_p3, %p526_p0 }
  0x18   :  { %504 = vmatpush3.bf16.msra.mxu1 %v520_v46 }
  0xd9   :  { %v93_v10 = vpop.f32.mrb[0].mxu0 }
  0xda   :  { %v479_v11 = vpop.f32.mrb[1].mxu0 }
  0xdb   :  { %v96_v12 = vpop.f32.mrb[2].mxu0 }
  0xdc   :  { %v480_v13 = vpop.f32.mrb[3].mxu0 }
  0xe1   :  { %v149_v14 = vpop.f32.mrb[4].mxu0 }
  0xe2   :  { %v150_v16 = vadd.f32 %v149_v14, %v93_v10  ;;  %v487_v17 = vpop.f32.mrb[5].mxu0 }
  0xe3   :  { %v152_v18 = vpop.f32.mrb[6].mxu0 }
  0xe4   :  { %v162_v19 = vadd.f32 %v449_v15, %v150_v16  ;;  %v488_v20 = vpop.f32.mrb[7].mxu0 }
  0xe6   :  { %v164_v21 = vsel %vm163_vm4, %v162_v19, 0.0  ;;  %v169_v22 = vmul.f32 %v162_v19, %v162_v19 }
  0xe7   :  { %165 = vadd.xlane.f32.xlu0 %v164_v21 }
  0xe8   :  { %v170_v23 = vsel %vm163_vm4, %v169_v22, 0.0 }
  0xeb   :  { %171 = vadd.xlane.f32.xlu0 %v170_v23 }
 0x174   :  { %v166_v28 = vpop.xlane.xlu0 %165 }
 0x175   :  { %v168_v29 = vmul.f32 0.03125, %v166_v28 }
 0x177   :  { %v174_v31 = vmul.f32 %v168_v29, %v168_v29  ;;  %v177_v36 = vsub.f32 %v162_v19, %v168_v29 }
 0x178   :  { %v172_v30 = vpop.xlane.xlu0 %171 }
 0x179   :  { %v173_v32 = vmul.f32 0.03125, %v172_v30 }
 0x17b   :  { %v175_v33 = vsub.f32 %v173_v32, %v174_v31 }
 0x17d   :  { %v176_v34 = vmax.f32 %v175_v33, 0.0 }
 0x17f   :  { %v178_v35 = vadd.f32 1e-05, %v176_v34 }
 0x181   :  { %521 = vrsqrt.f32 %v178_v35 }
 0x18b   :  { %v522_v37 = vpop.eup %521 }
 0x18c   :  { %v180_v39 = vmul.f32 %v522_v37, %v177_v36 }
 0x18e   :  { %v188_v41 = vmul.f32 %v450_v38, %v180_v39 }
 0x190   :  { %v196_v42 = vadd.f32 %v451_v40, %v188_v41 }
 0x192   :  { %523 = vtanh.f32 %v196_v42 }
 0x19c   :  { %v524_v43 = vpop.eup %523 }
 0x19d   :  { %v198_v44 = vpack.c.bf16 %v524_v43, %v524_v43 }
 0x19f   :  { %494 = vmatmul.mubr.msk.bf16.vlgmr.msra.gmra.mrb[8].mxu0 %vm163_vm4, %v198_v44 }
 0x272   :  { %v259_v48 = vpop.f32.mrb[8].mxu0 }
 0x273   :  { %v260_v49 = vadd.f32 %v452_v47, %v259_v48  ;;  %v495_v50 = vpop.f32.mrb[9].mxu0 }
 0x274   :  { %v262_v51 = vpop.f32.mrb[10].mxu0 }
 0x275   :  { %v265_v52 = vmax.f32 %v260_v49, 0.0  ;;  %v496_v53 = vpop.f32.mrb[11].mxu0 }
 0x277   :  { %v266_v54 = vpack.c.bf16 %v265_v52, %v265_v52 }
 0x279   :  { %506 = vmatmul.mubr.msk.bf16.vlgmr.msra.gmra.mrb[0].mxu1 %vm306_vm5, %v266_v54 }
 0x34c   :  { %v344_v56 = vpop.f32.mrb[0].mxu1 }
 0x34d   :  { %v345_v57 = vadd.f32 %v456_v55, %v344_v56  ;;  %v507_v58 = vpop.f32.mrb[1].mxu1 }
 0x34e   :  { %v347_v59 = vpop.f32.mrb[2].mxu1 }
 0x34f   :  { %357 = vrot.lane.b32.xlu1 %v345_v57, %s551_s10  ;;  %v508_v60 = vpop.f32.mrb[3].mxu1  ;;  %v351_v62 = vmul.f32 %v350_v61, %v345_v57 }
 0x351   :  { %v353_v63 = vsel %vm352_vm6, %v351_v62, 0.0 }
 0x373   :  { %354 = vadd.xlane.f32.xlu1 %v353_v63 }
 0x3c1   :  { %v358_v0 = vpop.permute.xlu1 %357 }
 0x3c2   :  { %v360_v1 = vmul.f32 %v358_v0, %v350_v61 }
 0x3c4   :  { %v361_v2 = vsel %vm352_vm6, %v360_v1, 0.0 }
 0x3c5   :  { %362 = vadd.xlane.f32.xlu0 %v361_v2 }
 0x400   :  { %v355_v3 = vpop.xlane.xlu1 %354 }
 0x401   :  { %364 = vxpose.xlu0.b32.start.end [1/1] (short) (narrow) %v355_v3, 8 }
 0x452   :  { %v363_v4 = vpop.xlane.xlu0 %362 }
 0x453   :  { %398 = vxpose.xlu1.b32.start.end [1/1] (short) (narrow) %v363_v4, 8 }
 0x481   :  { %v380_v5 = vpop.trf.xlu0 }
 0x482   :  { %397 = vst.msk [vmem:[#allocation2] sm:$0x1] %vm396_vm7, %v380_v5 }
 0x4d3   :  { %v414_v6 = vpop.trf.xlu1 }
 0x4d4   :  { %430 = vst.msk [vmem:[#allocation2 + $0x1] sm:$0x1] %vm396_vm7, %v414_v6 }
 0x4d5   :  { %536 = shalt.err (!%p533_p4)
}
 0x4d6   :  { %s537_s0 = scalar_lea.hbm %s715_s12, 32 }
 0x4d7   :  { %p538_p5 = scmp.ne.s32.totalorder %s715_s12, %s537_s0  ;;  %p541_p6 = scmp.lt.u32.totalorder %s537_s0, %s715_s12 }
 0x4d9   :  { %p543_p7 = pnand %p541_p6, %p538_p5 }
 0x4db   :  { %546 = shalt.err (!%p543_p7)
}
 0x4dc   :  { %440 = dma.vmem_to_hbm [thread:$0]  %s438_s27, 32, %s715_s12, [#allocation3]  }
 0x4dd   :  { %547 = dma.done.wait [#allocation3], 32  }
 0x4de   :  { %548 = vsyncadd [#allocation3], 4294967264 }
 0x4df   :  { %444 = vsyncpa [#allocation3], 1 }

</bundles_post_ra>
